<compile_context>
chip_gen: v6e
topology: v6e:2x2x1
jax: 0.10.0
libtpu: 0.0.40
codegen_flags: <defaults>
</compile_context>

<pallas_src>
import functools

import jax
import jax.numpy as jnp
from jax.experimental import pallas as pl
from jax.experimental.pallas import tpu as pltpu


def _round_up(x, m):
    return (x + m - 1) // m * m


def _ceil_div(a, b):
    return -(-a // b)


def _num_tensorcores():
    """Best-effort TensorCore-per-chip count (2 on v7x, else 1)."""
    try:
        kind = jax.devices()[0].device_kind.lower()
    except Exception:  # narrow heuristic only; never affects correctness
        return 1
    return 2 if ("v7" in kind or "tpu7" in kind) else 1


def mlp_kernel(x_ref, w1_ref, b1_ref, w2_ref, b2_ref, o_ref):
    # Layer 1: Linear (MXU, f32 accumulate) + bias + ReLU (VPU, f32).
    h = jnp.dot(x_ref[...], w1_ref[...], preferred_element_type=jnp.float32)
    h = jnp.maximum(h + b1_ref[...], 0.0)
    # Layer 2: Linear + out_actv = ReLU.
    # h is cast to the weight dtype before the second matmul: a no-op for f32
    # weights; for bf16 weights it trades intermediate mantissa bits for
    # native-rate MXU throughput (fine for inference).
    y = jnp.dot(h.astype(w2_ref.dtype), w2_ref[...],
                preferred_element_type=jnp.float32)
    y = jnp.maximum(y + b2_ref[...], 0.0)
    o_ref[...] = y.astype(o_ref.dtype)


@functools.lru_cache(maxsize=None)
def _build_mlp_call(Bp, D_in, H1p, H2p, tm, dtype_name):
    dtype = jnp.dtype(dtype_name)
    itemsize = dtype.itemsize

    in_specs = [
        # x tile: full (unpadded) contraction extent; streamed / pipelined.
        pl.BlockSpec((tm, D_in), lambda i: (i, 0)),
        # Weights / biases: grid-invariant (resident), default buffering.
        pl.BlockSpec((D_in, H1p), lambda i: (0, 0)),
        pl.BlockSpec((1, H1p), lambda i: (0, 0)),
        pl.BlockSpec((H1p, H2p), lambda i: (0, 0)),
        pl.BlockSpec((1, H2p), lambda i: (0, 0)),
    ]

    # VMEM budget: double-buffered x/out tiles + (double-buffered) weights +
    # f32 intermediates.  Request ~2x with a 48 MiB cap (headroom on v7x).
    w_bytes = 2 * (D_in * H1p + H1p * H2p + H1p + H2p) * itemsize
    act_bytes = 2 * tm * (D_in + H2p) * itemsize
    tmp_bytes = tm * (H1p + H2p) * 4
    needed = w_bytes + act_bytes + tmp_bytes
    vmem_limit = int(min(max(2 * needed, 4 * 1024 * 1024), 48 * 1024 * 1024))

    flops = 2 * Bp * (D_in * H1p + H1p * H2p)
    bytes_accessed = (Bp * D_in + D_in * H1p + H1p + H1p * H2p + H2p
                      + Bp * H2p) * itemsize

    return pl.pallas_call(
        mlp_kernel,
        out_shape=jax.ShapeDtypeStruct((Bp, H2p), dtype),
        grid_spec=pltpu.PrefetchScalarGridSpec(
            num_scalar_prefetch=0,
            grid=(Bp // tm,),
            in_specs=in_specs,
            out_specs=pl.BlockSpec((tm, H2p), lambda i: (i, 0)),
        ),
        compiler_params=pltpu.CompilerParams(
            dimension_semantics=("parallel",),
            vmem_limit_bytes=vmem_limit,
        ),
        cost_estimate=pl.CostEstimate(
            flops=flops, transcendentals=0, bytes_accessed=bytes_accessed),
    )


def _pad_to(a, shape):
    pads = [(0, s - d) for d, s in zip(a.shape, shape)]
    if all(p == (0, 0) for p in pads):
        return a
    return jnp.pad(a, pads)


def prepare_mlp_params(w1, b1, w2, b2):
    """One-time weight prep: pad feature dims to lane multiples, reshape biases.

    Zero padding keeps the math exact: padded hidden units have zero weights
    and bias (ReLU(0)=0 contributes nothing downstream); padded output columns
    are sliced off in mlp_forward.  Call once and reuse the result.
    """
    D_in, H1 = w1.shape
    H2 = w2.shape[1]
    H1p = _round_up(H1, 128)
    H2p = _round_up(H2, 128)
    w1p = _pad_to(w1, (D_in, H1p))
    b1p = _pad_to(jnp.reshape(b1, (1, H1)), (1, H1p))
    w2p = _pad_to(w2, (H1p, H2p))
    b2p = _pad_to(jnp.reshape(b2, (1, H2)), (1, H2p))
    return (w1p, b1p, w2p, b2p), H2


def mlp_forward(x, prepared_params, out_features, *, tm=None):
    """Fused MLP forward: relu(relu(x @ w1 + b1) @ w2 + b2).

    `prepared_params` must come from prepare_mlp_params (padded once, reused).
    """
    w1p, b1p, w2p, b2p = prepared_params
    B, D_in = x.shape
    H1p = w1p.shape[1]
    H2p = w2p.shape[1]
    dtype = x.dtype

    # Batch tiling: big tiles for MXU row occupancy / DMA amortization, sized
    # to the batch so padding waste is < one sublane group.
    sub = 16 if dtype == jnp.bfloat16 else 8
    if tm is None:
        tm = 1024 if dtype == jnp.bfloat16 else 512
    n_steps = max(1, _ceil_div(B, tm))
    tm_eff = _round_up(_ceil_div(B, n_steps), sub)

    # v7x only: split a single large tile across the two TensorCores, but keep
    # >= 256 rows per tile so each 256-wide MXU stays fully fed.
    if n_steps == 1 and _num_tensorcores() >= 2 and tm_eff >= 512:
        n_steps = 2
        tm_eff = _round_up(_ceil_div(B, n_steps), sub)

    Bp = _round_up(B, tm_eff)

    # Only the batch dim is (possibly) padded on the host; padded rows are
    # sliced off below.  K is left at its native extent (full-array block dim).
    xp = _pad_to(x, (Bp, D_in))

    call = _build_mlp_call(Bp, D_in, H1p, H2p, tm_eff, dtype.name)
    out = call(xp, w1p, b1p, w2p, b2p)
    return out[:B, :out_features]


def init_mlp_params(key, in_features=784, h_dims=(256, 256), dtype=jnp.float32):
    """Mimics nn.Linear's uniform(-1/sqrt(fan_in), 1/sqrt(fan_in)) init."""
    params = []
    fan_in = in_features
    for h in h_dims:
        key, kw, kb = jax.random.split(key, 3)
        bound = 1.0 / float(fan_in) ** 0.5
        w = jax.random.uniform(kw, (fan_in, h), dtype, -bound, bound)
        b = jax.random.uniform(kb, (h,), dtype, -bound, bound)
        params.extend([w, b])
        fan_in = h
    return params


if __name__ == "__main__":
    key = jax.random.PRNGKey(0)
    D_in, H = 784, 256  # module defaults: 784 -> 256 -> 256

    key, kx = jax.random.split(key)
    w1, b1, w2, b2 = init_mlp_params(key, D_in, (H, H))

    # One-time weight prep (padding / bias reshape hoisted out of the forward).
    prepared, out_features = prepare_mlp_params(w1, b1, w2, b2)

    def ref_fn(x):
        return jnp.maximum(jnp.maximum(x @ w1 + b1, 0.0) @ w2 + b2, 0.0)

    # Small aligned batch + a ragged batch (exercises batch padding / tiling).
    for batch in (8, 40):
        kx, kb = jax.random.split(kx)
        x = jax.random.normal(kb, (batch, D_in), jnp.float32)
        out = jax.block_until_ready(mlp_forward(x, prepared, out_features))
        ref = ref_fn(x)
        assert out.shape == (batch, H)
        assert jnp.allclose(out, ref, atol=1e-4, rtol=1e-4)

    print("KERNEL_OK")
</pallas_src>

<mosaic_0001>
module attributes {stable_mosaic.version = 11 : i64} {
  func.func @mlp_kernel(%arg0: i32, %arg1: memref<8x784xf32, #tpu.memory_space<vmem>>, %arg2: memref<784x256xf32, #tpu.memory_space<vmem>>, %arg3: memref<1x256xf32, #tpu.memory_space<vmem>>, %arg4: memref<256x256xf32, #tpu.memory_space<vmem>>, %arg5: memref<1x256xf32, #tpu.memory_space<vmem>>, %arg6: memref<8x256xf32, #tpu.memory_space<vmem>>) attributes {dimension_semantics = [#tpu.dimension_semantics<parallel>], iteration_bounds = array<i64: 1>, scalar_prefetch = 0 : i64, scratch_operands = 0 : i64, tpu.core_type = #tpu.core_type<tc>, window_params = [{transform_indices = @transform_0, window_bounds = array<i64: 8, 784>}, {pipeline_mode = #tpu.pipeline_mode<synchronous>, transform_indices = @transform_1, window_bounds = array<i64: 784, 256>}, {pipeline_mode = #tpu.pipeline_mode<synchronous>, transform_indices = @transform_2, window_bounds = array<i64: 1, 256>}, {pipeline_mode = #tpu.pipeline_mode<synchronous>, transform_indices = @transform_3, window_bounds = array<i64: 256, 256>}, {pipeline_mode = #tpu.pipeline_mode<synchronous>, transform_indices = @transform_4, window_bounds = array<i64: 1, 256>}, {transform_indices = @transform_5, window_bounds = array<i64: 8, 256>}]} {
    %c0 = arith.constant 0 : index
    %c0_0 = arith.constant 0 : index
    %0 = vector.load %arg1[%c0, %c0_0] : memref<8x784xf32, #tpu.memory_space<vmem>>, vector<8x784xf32>
    %c0_1 = arith.constant 0 : index
    %c0_2 = arith.constant 0 : index
    %1 = vector.load %arg2[%c0_1, %c0_2] : memref<784x256xf32, #tpu.memory_space<vmem>>, vector<784x256xf32>
    %cst = arith.constant dense<0.000000e+00> : vector<8x256xf32>
    %2 = tpu.matmul %0, %1, %cst {dimension_numbers = #tpu.dot_dimension_numbers<[1], [0], [0], [1], [0, 0, 1, 1], [], []>} : vector<8x784xf32>, vector<784x256xf32>, vector<8x256xf32> -> vector<8x256xf32>
    %c0_3 = arith.constant 0 : index
    %c0_4 = arith.constant 0 : index
    %3 = vector.load %arg3[%c0_3, %c0_4] : memref<1x256xf32, #tpu.memory_space<vmem>>, vector<1x256xf32>
    %4 = vector.broadcast %3 : vector<1x256xf32> to vector<8x256xf32>
    %5 = arith.addf %2, %4 : vector<8x256xf32>
    %cst_5 = arith.constant 0.000000e+00 : f32
    %6 = vector.broadcast %cst_5 : f32 to vector<8x256xf32>
    %7 = arith.maximumf %5, %6 : vector<8x256xf32>
    %c0_6 = arith.constant 0 : index
    %c0_7 = arith.constant 0 : index
    %8 = vector.load %arg4[%c0_6, %c0_7] : memref<256x256xf32, #tpu.memory_space<vmem>>, vector<256x256xf32>
    %cst_8 = arith.constant dense<0.000000e+00> : vector<8x256xf32>
    %9 = tpu.matmul %7, %8, %cst_8 {dimension_numbers = #tpu.dot_dimension_numbers<[1], [0], [0], [1], [0, 0, 1, 1], [], []>} : vector<8x256xf32>, vector<256x256xf32>, vector<8x256xf32> -> vector<8x256xf32>
    %c0_9 = arith.constant 0 : index
    %c0_10 = arith.constant 0 : index
    %10 = vector.load %arg5[%c0_9, %c0_10] : memref<1x256xf32, #tpu.memory_space<vmem>>, vector<1x256xf32>
    %11 = vector.broadcast %10 : vector<1x256xf32> to vector<8x256xf32>
    %12 = arith.addf %9, %11 : vector<8x256xf32>
    %cst_11 = arith.constant 0.000000e+00 : f32
    %13 = vector.broadcast %cst_11 : f32 to vector<8x256xf32>
    %14 = arith.maximumf %12, %13 : vector<8x256xf32>
    %c0_12 = arith.constant 0 : index
    %c0_13 = arith.constant 0 : index
    %15 = vector.load %arg6[%c0_12, %c0_13] : memref<8x256xf32, #tpu.memory_space<vmem>>, vector<8x256xf32>
    tpu.vector_store %arg6[%c0_12, %c0_13], %14 {strides = array<i32>} : memref<8x256xf32, #tpu.memory_space<vmem>>, vector<8x256xf32>,
    return
  }
  func.func @transform_0(%arg0: i32) -> (i32, i32) {
    %c0_i32 = arith.constant 0 : i32
    %c0_i32_0 = arith.constant 0 : i32
    return %arg0, %c0_i32 : i32, i32
  }
  func.func @transform_1(%arg0: i32) -> (i32, i32) {
    %c0_i32 = arith.constant 0 : i32
    %c0_i32_0 = arith.constant 0 : i32
    %c0_i32_1 = arith.constant 0 : i32
    return %c0_i32, %c0_i32_0 : i32, i32
  }
  func.func @transform_2(%arg0: i32) -> (i32, i32) {
    %c0_i32 = arith.constant 0 : i32
    %c0_i32_0 = arith.constant 0 : i32
    %c0_i32_1 = arith.constant 0 : i32
    return %c0_i32, %c0_i32_0 : i32, i32
  }
  func.func @transform_3(%arg0: i32) -> (i32, i32) {
    %c0_i32 = arith.constant 0 : i32
    %c0_i32_0 = arith.constant 0 : i32
    %c0_i32_1 = arith.constant 0 : i32
    return %c0_i32, %c0_i32_0 : i32, i32
  }
  func.func @transform_4(%arg0: i32) -> (i32, i32) {
    %c0_i32 = arith.constant 0 : i32
    %c0_i32_0 = arith.constant 0 : i32
    %c0_i32_1 = arith.constant 0 : i32
    return %c0_i32, %c0_i32_0 : i32, i32
  }
  func.func @transform_5(%arg0: i32) -> (i32, i32) {
    %c0_i32 = arith.constant 0 : i32
    %c0_i32_0 = arith.constant 0 : i32
    return %arg0, %c0_i32 : i32, i32
  }
}

</mosaic_0001>

<bundles_post_ra>
// kernel: tpu_custom_call.1
= control target key start
LH: loop header
LB: loop body
LE: loop exit
PB: predicated region body
PF: predicated region fallthrough
CT: control target
= control target key end

     0   :  { %10 = vsyncpa [#allocation3], 0  ;;  %s881_s0 = inlined_call_operand.hbm [shape: f32[8,784], index: 0, kind: input, shape index: {}]   ;;  %s882_s1 = inlined_call_operand.hbm [shape: f32[784,256], index: 1, kind: input, shape index: {}]   ;;  %s883_s2 = inlined_call_operand.vmem [shape: f32[1,256], index: 2, kind: input, shape index: {}]   ;;  %s884_s3 = inlined_call_operand.hbm [shape: f32[256,256], index: 3, kind: input, shape index: {}]   ;;  %s885_s4 = inlined_call_operand.vmem [shape: f32[1,256], index: 4, kind: input, shape index: {}]   ;;  %s886_s5 = inlined_call_operand.hbm [shape: f32[8,256], index: 5, kind: output, shape index: {}]  }
   0x1   :  { %11 = vsyncpa [#allocation6], 0 }
   0x2   :  { %12 = vsyncpa [#allocation4], 0  ;;  %s826_s18 = smov [#allocation5]  }
   0x3   :  { %s28_s19 = sshll.u32 %s826_s18, 4  ;;  %s29_s19 = int_to_ptr.vmem [resolvable:$true] %s28_s19 }
   0x4   :  { %s748_s20 = scalar_lea.vmem %s29_s19, 25088  ;;  %p753_p1 = scmp.lt.s32.totalorder %s29_s19, %s29_s19 }
   0x5   :  { %p749_p0 = scmp.ne.s32.totalorder %s29_s19, %s748_s20  ;;  %p754_p2 = scmp.lt.s32.totalorder %s748_s20, %s748_s20 }
   0x7   :  { %p755_p3 = por %p754_p2, %p753_p1 }
   0x9   :  { %p756_p4 = pnand %p755_p3, %p749_p0 }
   0xb   :  { %759 = shalt.err (!%p756_p4)
}
   0xc   :  { %s827_s21 = smov 256   ;;  %s828_s22 = smov 16  }
   0xd   :  { %34 = dma.hbm_to_vmem [thread:$0]  %s882_s1, 25088, %s29_s19, [#allocation6], %s827_s21, %s827_s21, %s828_s22  }
   0xe   :  { %s829_s25 = smov [#allocation2]   ;;  %s830_s27 = smov [#allocation7]  }
   0xf   :  { %s19_s26 = sshll.u32 %s829_s25, 4  ;;  %s42_s28 = sshll.u32 %s830_s27, 4  ;;  %s20_s26 = int_to_ptr.vmem [resolvable:$true] %s19_s26  ;;  %s43_s28 = int_to_ptr.vmem [resolvable:$true] %s42_s28 }
  0x10   :  { %s768_s29 = scalar_lea.vmem %s20_s26, 896  ;;  %p773_p6 = scmp.lt.s32.totalorder %s20_s26, %s20_s26 }
  0x11   :  { %p769_p5 = scmp.ne.s32.totalorder %s20_s26, %s768_s29  ;;  %p774_p7 = scmp.lt.s32.totalorder %s768_s29, %s768_s29 }
  0x13   :  { %p775_p8 = por %p774_p7, %p773_p6 }
  0x15   :  { %p776_p9 = pnand %p775_p8, %p769_p5 }
  0x17   :  { %779 = shalt.err (!%p776_p9)
}
  0x18   :  { %22 = dma.hbm_to_vmem [thread:$0]  %s881_s0, 896, %s20_s26, [#allocation3]  }
  0x19   :  { %s788_s7 = scalar_lea.vmem %s43_s28, 8192  ;;  %p793_p11 = scmp.lt.s32.totalorder %s43_s28, %s43_s28 }
  0x1a   :  { %p789_p10 = scmp.ne.s32.totalorder %s43_s28, %s788_s7  ;;  %p794_p12 = scmp.lt.s32.totalorder %s788_s7, %s788_s7 }
  0x1c   :  { %p795_p13 = por %p794_p12, %p793_p11 }
  0x1e   :  { %p796_p0 = pnand %p795_p13, %p789_p10 }
  0x20   :  { %799 = shalt.err (!%p796_p0)
}
  0x21   :  { %48 = dma.hbm_to_vmem [thread:$0]  %s884_s3, 8192, %s43_s28, [#allocation6], %s827_s21, %s827_s21, %s828_s22  }
  0x22   :  { %820 = dma.done.wait [#allocation3], 896  }
  0x23   :  { %821 = vsyncadd [#allocation3], 4294966400 }
  0x24   :  { %822 = dma.done.wait [#allocation6], 33280  }
  0x25   :  { %823 = vsyncadd [#allocation6], 4294934016  ;;  %v98_v0 = vld [vmem:[#allocation5 + $0xf8] sm:$0xff]  ;;  %v97_v1 = vld [vmem:[#allocation5 + $0xf0] sm:$0xff]  ;;  %vm275_vm0 = vcmask 130048   ;;  %s832_s10 = smov [#allocation8]  }
  0x26   :  { %v96_v2 = vld [vmem:[#allocation5 + $0xe8] sm:$0xff]  ;;  %279 = vmatprep.subr.mxu0 %v98_v0  ;;  %v162_v3 = vld [vmem:[#allocation5 + $0x2f8] sm:$0xff]  ;;  %v95_v4 = vld [vmem:[#allocation5 + $0xe0] sm:$0xff]  ;;  %s722_s11 = sshll.u32 %s832_s10, 4  ;;  %s723_s11 = int_to_ptr.vmem [resolvable:$true] %s722_s11 }
  0x27   :  { %v161_v5 = vld [vmem:[#allocation5 + $0x2f0] sm:$0xff]  ;;  %280 = vmatpush1.msra.mxu0 %v97_v1  ;;  %350 = vmatprep.subr.mxu1 %v162_v3  ;;  %v94_v6 = vld [vmem:[#allocation5 + $0xd8] sm:$0xff]  ;;  %v160_v7 = vld [vmem:[#allocation5 + $0x2e8] sm:$0xff]  ;;  %s800_s12 = scalar_lea.vmem %s723_s11, 256  ;;  %p805_p2 = scmp.lt.s32.totalorder %s723_s11, %s723_s11 }
  0x28   :  { %281 = vmatprep.subr.mxu0 %v96_v2  ;;  %351 = vmatpush1.msra.mxu1 %v161_v5  ;;  %v93_v8 = vld [vmem:[#allocation5 + $0xd0] sm:$0xff]  ;;  %v159_v9 = vld [vmem:[#allocation5 + $0x2e0] sm:$0xff]  ;;  %v158_v10 = vld [vmem:[#allocation5 + $0x2d8] sm:$0xff]  ;;  %p801_p1 = scmp.ne.s32.totalorder %s723_s11, %s800_s12  ;;  %p806_p3 = scmp.lt.s32.totalorder %s800_s12, %s800_s12 }
  0x29   :  { %282 = vmatpush1.msra.mxu0 %v95_v4  ;;  %352 = vmatprep.subr.mxu1 %v160_v7  ;;  %v92_v11 = vld [vmem:[#allocation5 + $0xc8] sm:$0xff]  ;;  %v157_v12 = vld [vmem:[#allocation5 + $0x2d0] sm:$0xff]  ;;  %v91_v13 = vld [vmem:[#allocation5 + $0xc0] sm:$0xff] }
  0x2a   :  { %283 = vmatprep.subr.mxu0 %v94_v6  ;;  %353 = vmatpush1.msra.mxu1 %v159_v9  ;;  %v156_v14 = vld [vmem:[#allocation5 + $0x2c8] sm:$0xff]  ;;  %v90_v15 = vld [vmem:[#allocation5 + $0xb8] sm:$0xff]  ;;  %v155_v16 = vld [vmem:[#allocation5 + $0x2c0] sm:$0xff]  ;;  %p807_p4 = por %p806_p3, %p805_p2 }
  0x2b   :  { %284 = vmatpush1.msra.mxu0 %v93_v8  ;;  %354 = vmatprep.subr.mxu1 %v158_v10  ;;  %v89_v17 = vld [vmem:[#allocation5 + $0xb0] sm:$0xff]  ;;  %v154_v18 = vld [vmem:[#allocation5 + $0x2b8] sm:$0xff]  ;;  %v88_v19 = vld [vmem:[#allocation5 + $0xa8] sm:$0xff] }
  0x2c   :  { %285 = vmatprep.subr.mxu0 %v92_v11  ;;  %355 = vmatpush1.msra.mxu1 %v157_v12  ;;  %v153_v20 = vld [vmem:[#allocation5 + $0x2b0] sm:$0xff]  ;;  %v87_v21 = vld [vmem:[#allocation5 + $0xa0] sm:$0xff]  ;;  %v152_v22 = vld [vmem:[#allocation5 + $0x2a8] sm:$0xff]  ;;  %p808_p5 = pnand %p807_p4, %p801_p1 }
  0x2d   :  { %286 = vmatpush1.msra.mxu0 %v91_v13  ;;  %356 = vmatprep.subr.mxu1 %v156_v14  ;;  %v86_v23 = vld [vmem:[#allocation5 + $0x98] sm:$0xff]  ;;  %v151_v24 = vld [vmem:[#allocation5 + $0x2a0] sm:$0xff]  ;;  %v85_v25 = vld [vmem:[#allocation5 + $0x90] sm:$0xff] }
  0x2e   :  { %287 = vmatprep.subr.mxu0 %v90_v15  ;;  %357 = vmatpush1.msra.mxu1 %v155_v16  ;;  %v150_v26 = vld [vmem:[#allocation5 + $0x298] sm:$0xff]  ;;  %v84_v27 = vld [vmem:[#allocation5 + $0x88] sm:$0xff]  ;;  %v149_v28 = vld [vmem:[#allocation5 + $0x290] sm:$0xff] }
  0x2f   :  { %288 = vmatpush1.msra.mxu0 %v89_v17  ;;  %358 = vmatprep.subr.mxu1 %v154_v18  ;;  %v83_v29 = vld [vmem:[#allocation5 + $0x80] sm:$0xff]  ;;  %v148_v30 = vld [vmem:[#allocation5 + $0x288] sm:$0xff]  ;;  %v82_v31 = vld [vmem:[#allocation5 + $0x78] sm:$0xff] }
  0x30   :  { %289 = vmatprep.subr.mxu0 %v88_v19  ;;  %359 = vmatpush1.msra.mxu1 %v153_v20  ;;  %v147_v32 = vld [vmem:[#allocation5 + $0x280] sm:$0xff]  ;;  %v81_v33 = vld [vmem:[#allocation5 + $0x70] sm:$0xff]  ;;  %v146_v34 = vld [vmem:[#allocation5 + $0x278] sm:$0xff] }
  0x31   :  { %290 = vmatpush1.msra.mxu0 %v87_v21  ;;  %360 = vmatprep.subr.mxu1 %v152_v22  ;;  %v80_v35 = vld [vmem:[#allocation5 + $0x68] sm:$0xff]  ;;  %v145_v36 = vld [vmem:[#allocation5 + $0x270] sm:$0xff]  ;;  %v79_v37 = vld [vmem:[#allocation5 + $0x60] sm:$0xff] }
  0x32   :  { %291 = vmatprep.subr.mxu0 %v86_v23  ;;  %361 = vmatpush1.msra.mxu1 %v151_v24  ;;  %v144_v38 = vld [vmem:[#allocation5 + $0x268] sm:$0xff]  ;;  %v78_v39 = vld [vmem:[#allocation5 + $0x58] sm:$0xff]  ;;  %v143_v40 = vld [vmem:[#allocation5 + $0x260] sm:$0xff] }
  0x33   :  { %292 = vmatpush1.msra.mxu0 %v85_v25  ;;  %362 = vmatprep.subr.mxu1 %v150_v26  ;;  %v77_v41 = vld [vmem:[#allocation5 + $0x50] sm:$0xff]  ;;  %v142_v42 = vld [vmem:[#allocation5 + $0x258] sm:$0xff]  ;;  %v76_v43 = vld [vmem:[#allocation5 + $0x48] sm:$0xff] }
  0x34   :  { %293 = vmatprep.subr.mxu0 %v84_v27  ;;  %363 = vmatpush1.msra.mxu1 %v149_v28  ;;  %v141_v44 = vld [vmem:[#allocation5 + $0x250] sm:$0xff]  ;;  %v75_v45 = vld [vmem:[#allocation5 + $0x40] sm:$0xff]  ;;  %v140_v46 = vld [vmem:[#allocation5 + $0x248] sm:$0xff] }
  0x35   :  { %294 = vmatpush1.msra.mxu0 %v83_v29  ;;  %364 = vmatprep.subr.mxu1 %v148_v30  ;;  %v74_v47 = vld [vmem:[#allocation5 + $0x38] sm:$0xff]  ;;  %v139_v48 = vld [vmem:[#allocation5 + $0x240] sm:$0xff]  ;;  %v73_v49 = vld [vmem:[#allocation5 + $0x30] sm:$0xff] }
  0x36   :  { %295 = vmatprep.subr.mxu0 %v82_v31  ;;  %365 = vmatpush1.msra.mxu1 %v147_v32  ;;  %v138_v50 = vld [vmem:[#allocation5 + $0x238] sm:$0xff]  ;;  %v72_v51 = vld [vmem:[#allocation5 + $0x28] sm:$0xff]  ;;  %v137_v52 = vld [vmem:[#allocation5 + $0x230] sm:$0xff] }
  0x37   :  { %296 = vmatpush1.msra.mxu0 %v81_v33  ;;  %366 = vmatprep.subr.mxu1 %v146_v34  ;;  %v71_v53 = vld [vmem:[#allocation5 + $0x20] sm:$0xff]  ;;  %v136_v54 = vld [vmem:[#allocation5 + $0x228] sm:$0xff]  ;;  %v70_v55 = vld [vmem:[#allocation5 + $0x18] sm:$0xff] }
  0x38   :  { %297 = vmatprep.subr.mxu0 %v80_v35  ;;  %367 = vmatpush1.msra.mxu1 %v145_v36  ;;  %v135_v56 = vld [vmem:[#allocation5 + $0x220] sm:$0xff]  ;;  %v69_v57 = vld [vmem:[#allocation5 + $0x10] sm:$0xff]  ;;  %v134_v58 = vld [vmem:[#allocation5 + $0x218] sm:$0xff] }
  0x39   :  { %298 = vmatpush1.msra.mxu0 %v79_v37  ;;  %368 = vmatprep.subr.mxu1 %v144_v38  ;;  %v68_v59 = vld [vmem:[#allocation5 + $0x8] sm:$0xff]  ;;  %v133_v60 = vld [vmem:[#allocation5 + $0x210] sm:$0xff]  ;;  %v67_v61 = vld [vmem:[#allocation5] sm:$0xff] }
  0x3a   :  { %299 = vmatprep.subr.mxu0 %v78_v39  ;;  %369 = vmatpush1.msra.mxu1 %v143_v40  ;;  %v132_v62 = vld [vmem:[#allocation5 + $0x208] sm:$0xff]  ;;  %v130_v63 = vld [vmem:[#allocation5 + $0x1f8] sm:$0xff]  ;;  %v131_v0 = vld [vmem:[#allocation5 + $0x200] sm:$0xff] }
  0x3b   :  { %300 = vmatpush1.msra.mxu0 %v77_v41  ;;  %370 = vmatprep.subr.mxu1 %v142_v42  ;;  %v129_v1 = vld [vmem:[#allocation5 + $0x1f0] sm:$0xff]  ;;  %v194_v2 = vld [vmem:[#allocation5 + $0x3f8] sm:$0xff]  ;;  %v128_v3 = vld [vmem:[#allocation5 + $0x1e8] sm:$0xff] }
  0x3c   :  { %301 = vmatprep.subr.mxu0 %v76_v43  ;;  %371 = vmatpush1.msra.mxu1 %v141_v44  ;;  %v193_v4 = vld [vmem:[#allocation5 + $0x3f0] sm:$0xff]  ;;  %v127_v5 = vld [vmem:[#allocation5 + $0x1e0] sm:$0xff]  ;;  %v192_v6 = vld [vmem:[#allocation5 + $0x3e8] sm:$0xff] }
  0x3d   :  { %302 = vmatpush1.msra.mxu0 %v75_v45  ;;  %372 = vmatprep.subr.mxu1 %v140_v46  ;;  %v126_v7 = vld [vmem:[#allocation5 + $0x1d8] sm:$0xff]  ;;  %v191_v8 = vld [vmem:[#allocation5 + $0x3e0] sm:$0xff]  ;;  %v125_v9 = vld [vmem:[#allocation5 + $0x1d0] sm:$0xff] }
  0x3e   :  { %303 = vmatprep.subr.mxu0 %v74_v47  ;;  %373 = vmatpush1.msra.mxu1 %v139_v48  ;;  %v190_v10 = vld [vmem:[#allocation5 + $0x3d8] sm:$0xff]  ;;  %v124_v11 = vld [vmem:[#allocation5 + $0x1c8] sm:$0xff]  ;;  %v189_v12 = vld [vmem:[#allocation5 + $0x3d0] sm:$0xff] }
  0x3f   :  { %304 = vmatpush1.msra.mxu0 %v73_v49  ;;  %374 = vmatprep.subr.mxu1 %v138_v50  ;;  %v123_v13 = vld [vmem:[#allocation5 + $0x1c0] sm:$0xff]  ;;  %v188_v14 = vld [vmem:[#allocation5 + $0x3c8] sm:$0xff]  ;;  %v122_v15 = vld [vmem:[#allocation5 + $0x1b8] sm:$0xff] }
  0x40   :  { %305 = vmatprep.subr.mxu0 %v72_v51  ;;  %375 = vmatpush1.msra.mxu1 %v137_v52  ;;  %v187_v16 = vld [vmem:[#allocation5 + $0x3c0] sm:$0xff]  ;;  %v121_v17 = vld [vmem:[#allocation5 + $0x1b0] sm:$0xff]  ;;  %v186_v18 = vld [vmem:[#allocation5 + $0x3b8] sm:$0xff] }
  0x41   :  { %306 = vmatpush1.msra.mxu0 %v71_v53  ;;  %376 = vmatprep.subr.mxu1 %v136_v54  ;;  %v120_v19 = vld [vmem:[#allocation5 + $0x1a8] sm:$0xff]  ;;  %v185_v20 = vld [vmem:[#allocation5 + $0x3b0] sm:$0xff]  ;;  %v119_v21 = vld [vmem:[#allocation5 + $0x1a0] sm:$0xff] }
  0x42   :  { %307 = vmatprep.subr.mxu0 %v70_v55  ;;  %377 = vmatpush1.msra.mxu1 %v135_v56  ;;  %v184_v22 = vld [vmem:[#allocation5 + $0x3a8] sm:$0xff]  ;;  %v118_v23 = vld [vmem:[#allocation5 + $0x198] sm:$0xff]  ;;  %v183_v24 = vld [vmem:[#allocation5 + $0x3a0] sm:$0xff] }
  0x43   :  { %308 = vmatpush1.msra.mxu0 %v69_v57  ;;  %378 = vmatprep.subr.mxu1 %v134_v58  ;;  %v117_v25 = vld [vmem:[#allocation5 + $0x190] sm:$0xff]  ;;  %v182_v26 = vld [vmem:[#allocation5 + $0x398] sm:$0xff]  ;;  %v116_v27 = vld [vmem:[#allocation5 + $0x188] sm:$0xff] }
  0x44   :  { %309 = vmatprep.subr.mxu0 %v68_v59  ;;  %379 = vmatpush1.msra.mxu1 %v133_v60  ;;  %v181_v28 = vld [vmem:[#allocation5 + $0x390] sm:$0xff]  ;;  %v115_v29 = vld [vmem:[#allocation5 + $0x180] sm:$0xff]  ;;  %v180_v30 = vld [vmem:[#allocation5 + $0x388] sm:$0xff] }
  0x45   :  { %310 = vmatpush1.msra.mxu0 %v67_v61  ;;  %380 = vmatprep.subr.mxu1 %v132_v62  ;;  %v114_v31 = vld [vmem:[#allocation5 + $0x178] sm:$0xff]  ;;  %v179_v32 = vld [vmem:[#allocation5 + $0x380] sm:$0xff]  ;;  %v113_v33 = vld [vmem:[#allocation5 + $0x170] sm:$0xff] }
  0x46   :  { %311 = vmatprep.subr.mxu0 %v130_v63  ;;  %381 = vmatpush1.msra.mxu1 %v131_v0  ;;  %v178_v34 = vld [vmem:[#allocation5 + $0x378] sm:$0xff]  ;;  %v112_v35 = vld [vmem:[#allocation5 + $0x168] sm:$0xff]  ;;  %v177_v36 = vld [vmem:[#allocation5 + $0x370] sm:$0xff] }
  0x47   :  { %312 = vmatpush2.msra.mxu0 %v129_v1  ;;  %382 = vmatprep.subr.mxu1 %v194_v2  ;;  %v111_v37 = vld [vmem:[#allocation5 + $0x160] sm:$0xff]  ;;  %v176_v38 = vld [vmem:[#allocation5 + $0x368] sm:$0xff]  ;;  %v110_v39 = vld [vmem:[#allocation5 + $0x158] sm:$0xff] }
  0x48   :  { %313 = vmatprep.subr.mxu0 %v128_v3  ;;  %383 = vmatpush2.msra.mxu1 %v193_v4  ;;  %v175_v40 = vld [vmem:[#allocation5 + $0x360] sm:$0xff]  ;;  %v109_v41 = vld [vmem:[#allocation5 + $0x150] sm:$0xff]  ;;  %v174_v42 = vld [vmem:[#allocation5 + $0x358] sm:$0xff] }
  0x49   :  { %314 = vmatpush2.msra.mxu0 %v127_v5  ;;  %384 = vmatprep.subr.mxu1 %v192_v6  ;;  %v108_v43 = vld [vmem:[#allocation5 + $0x148] sm:$0xff]  ;;  %v173_v44 = vld [vmem:[#allocation5 + $0x350] sm:$0xff]  ;;  %v107_v45 = vld [vmem:[#allocation5 + $0x140] sm:$0xff] }
  0x4a   :  { %315 = vmatprep.subr.mxu0 %v126_v7  ;;  %385 = vmatpush2.msra.mxu1 %v191_v8  ;;  %v172_v46 = vld [vmem:[#allocation5 + $0x348] sm:$0xff]  ;;  %v106_v47 = vld [vmem:[#allocation5 + $0x138] sm:$0xff]  ;;  %v171_v48 = vld [vmem:[#allocation5 + $0x340] sm:$0xff] }
  0x4b   :  { %316 = vmatpush2.msra.mxu0 %v125_v9  ;;  %386 = vmatprep.subr.mxu1 %v190_v10  ;;  %v105_v49 = vld [vmem:[#allocation5 + $0x130] sm:$0xff]  ;;  %v170_v50 = vld [vmem:[#allocation5 + $0x338] sm:$0xff]  ;;  %v104_v51 = vld [vmem:[#allocation5 + $0x128] sm:$0xff] }
  0x4c   :  { %317 = vmatprep.subr.mxu0 %v124_v11  ;;  %387 = vmatpush2.msra.mxu1 %v189_v12  ;;  %v169_v52 = vld [vmem:[#allocation5 + $0x330] sm:$0xff]  ;;  %v103_v53 = vld [vmem:[#allocation5 + $0x120] sm:$0xff]  ;;  %v168_v54 = vld [vmem:[#allocation5 + $0x328] sm:$0xff] }
  0x4d   :  { %318 = vmatpush2.msra.mxu0 %v123_v13  ;;  %388 = vmatprep.subr.mxu1 %v188_v14  ;;  %v102_v55 = vld [vmem:[#allocation5 + $0x118] sm:$0xff]  ;;  %v167_v56 = vld [vmem:[#allocation5 + $0x320] sm:$0xff]  ;;  %v101_v57 = vld [vmem:[#allocation5 + $0x110] sm:$0xff] }
  0x4e   :  { %319 = vmatprep.subr.mxu0 %v122_v15  ;;  %389 = vmatpush2.msra.mxu1 %v187_v16  ;;  %v166_v58 = vld [vmem:[#allocation5 + $0x318] sm:$0xff]  ;;  %v100_v59 = vld [vmem:[#allocation5 + $0x108] sm:$0xff]  ;;  %v61_v60 = vld [vmem:[#allocation2 + $0x8] sm:$0xff] }
  0x4f   :  { %320 = vmatpush2.msra.mxu0 %v121_v17  ;;  %390 = vmatprep.subr.mxu1 %v186_v18  ;;  %v99_v61 = vld [vmem:[#allocation5 + $0x100] sm:$0xff]  ;;  %v165_v62 = vld [vmem:[#allocation5 + $0x310] sm:$0xff]  ;;  %v60_v63 = vld [vmem:[#allocation2] sm:$0xff] }
  0x50   :  { %321 = vmatprep.subr.mxu0 %v120_v19  ;;  %391 = vmatpush2.msra.mxu1 %v185_v20  ;;  %v164_v0 = vld [vmem:[#allocation5 + $0x308] sm:$0xff]  ;;  %v226_v1 = vld [vmem:[#allocation5 + $0x4f8] sm:$0xff]  ;;  %v163_v2 = vld [vmem:[#allocation5 + $0x300] sm:$0xff] }
  0x51   :  { %322 = vmatpush2.msra.mxu0 %v119_v21  ;;  %392 = vmatprep.subr.mxu1 %v184_v22  ;;  %v63_v3 = vld [vmem:[#allocation2 + $0x18] sm:$0xff]  ;;  %v225_v4 = vld [vmem:[#allocation5 + $0x4f0] sm:$0xff]  ;;  %v62_v5 = vld [vmem:[#allocation2 + $0x10] sm:$0xff]  ;;  %v831_v22 = vmov 0.0  }
  0x52   :  { %323 = vmatprep.subr.mxu0 %v118_v23  ;;  %393 = vmatpush2.msra.mxu1 %v183_v24  ;;  %v224_v6 = vld [vmem:[#allocation5 + $0x4e8] sm:$0xff]  ;;  %v223_v7 = vld [vmem:[#allocation5 + $0x4e0] sm:$0xff]  ;;  %v262_v8 = vld [vmem:[#allocation5 + $0x618] sm:$0xff] }
  0x53   :  { %324 = vmatpush2.msra.mxu0 %v117_v25  ;;  %394 = vmatprep.subr.mxu1 %v182_v26  ;;  %v222_v9 = vld [vmem:[#allocation5 + $0x4d8] sm:$0xff]  ;;  %v261_v10 = vld [vmem:[#allocation5 + $0x610] sm:$0xff]  ;;  %v260_v12 = vld [vmem:[#allocation5 + $0x608] sm:$0xff] }
  0x54   :  { %325 = vmatprep.subr.mxu0 %v116_v27  ;;  %395 = vmatpush2.msra.mxu1 %v181_v28  ;;  %v221_v11 = vld [vmem:[#allocation5 + $0x4d0] sm:$0xff]  ;;  %v220_v13 = vld [vmem:[#allocation5 + $0x4c8] sm:$0xff]  ;;  %v219_v15 = vld [vmem:[#allocation5 + $0x4c0] sm:$0xff] }
  0x55   :  { %326 = vmatpush2.msra.mxu0 %v115_v29  ;;  %396 = vmatprep.subr.mxu1 %v180_v30  ;;  %v65_v14 = vld [vmem:[#allocation2 + $0x28] sm:$0xff]  ;;  %v259_v16 = vld [vmem:[#allocation5 + $0x600] sm:$0xff]  ;;  %v218_v17 = vld [vmem:[#allocation5 + $0x4b8] sm:$0xff] }
  0x56   :  { %327 = vmatprep.subr.mxu0 %v114_v31  ;;  %397 = vmatpush2.msra.mxu1 %v179_v32  ;;  %v217_v18 = vld [vmem:[#allocation5 + $0x4b0] sm:$0xff]  ;;  %v66_v19 = vld [vmem:[#allocation2 + $0x30] sm:$0xff]  ;;  %v216_v20 = vld [vmem:[#allocation5 + $0x4a8] sm:$0xff] }
  0x57   :  { %328 = vmatpush2.msra.mxu0 %v113_v33  ;;  %398 = vmatprep.subr.mxu1 %v178_v34  ;;  %v215_v21 = vld [vmem:[#allocation5 + $0x4a0] sm:$0xff]  ;;  %v214_v23 = vld [vmem:[#allocation5 + $0x498] sm:$0xff]  ;;  %v213_v24 = vld [vmem:[#allocation5 + $0x490] sm:$0xff] }
  0x58   :  { %329 = vmatprep.subr.mxu0 %v112_v35  ;;  %399 = vmatpush2.msra.mxu1 %v177_v36  ;;  %v212_v25 = vld [vmem:[#allocation5 + $0x488] sm:$0xff]  ;;  %v211_v26 = vld [vmem:[#allocation5 + $0x480] sm:$0xff]  ;;  %v210_v27 = vld [vmem:[#allocation5 + $0x478] sm:$0xff] }
  0x59   :  { %330 = vmatpush2.msra.mxu0 %v111_v37  ;;  %400 = vmatprep.subr.mxu1 %v176_v38  ;;  %v209_v28 = vld [vmem:[#allocation5 + $0x470] sm:$0xff]  ;;  %v208_v29 = vld [vmem:[#allocation5 + $0x468] sm:$0xff]  ;;  %v207_v30 = vld [vmem:[#allocation5 + $0x460] sm:$0xff] }
  0x5a   :  { %331 = vmatprep.subr.mxu0 %v110_v39  ;;  %401 = vmatpush2.msra.mxu1 %v175_v40  ;;  %v206_v31 = vld [vmem:[#allocation5 + $0x458] sm:$0xff]  ;;  %v205_v32 = vld [vmem:[#allocation5 + $0x450] sm:$0xff]  ;;  %v204_v33 = vld [vmem:[#allocation5 + $0x448] sm:$0xff] }
  0x5b   :  { %332 = vmatpush2.msra.mxu0 %v109_v41  ;;  %402 = vmatprep.subr.mxu1 %v174_v42  ;;  %v203_v34 = vld [vmem:[#allocation5 + $0x440] sm:$0xff]  ;;  %v202_v35 = vld [vmem:[#allocation5 + $0x438] sm:$0xff]  ;;  %v201_v36 = vld [vmem:[#allocation5 + $0x430] sm:$0xff] }
  0x5c   :  { %333 = vmatprep.subr.mxu0 %v108_v43  ;;  %403 = vmatpush2.msra.mxu1 %v173_v44  ;;  %v200_v37 = vld [vmem:[#allocation5 + $0x428] sm:$0xff]  ;;  %v199_v38 = vld [vmem:[#allocation5 + $0x420] sm:$0xff]  ;;  %v198_v39 = vld [vmem:[#allocation5 + $0x418] sm:$0xff] }
  0x5d   :  { %334 = vmatpush2.msra.mxu0 %v107_v45  ;;  %404 = vmatprep.subr.mxu1 %v172_v46  ;;  %v197_v40 = vld [vmem:[#allocation5 + $0x410] sm:$0xff]  ;;  %v196_v41 = vld [vmem:[#allocation5 + $0x408] sm:$0xff]  ;;  %v195_v42 = vld [vmem:[#allocation5 + $0x400] sm:$0xff] }
  0x5e   :  { %335 = vmatprep.subr.mxu0 %v106_v47  ;;  %405 = vmatpush2.msra.mxu1 %v171_v48  ;;  %v258_v43 = vld [vmem:[#allocation5 + $0x5f8] sm:$0xff]  ;;  %v257_v44 = vld [vmem:[#allocation5 + $0x5f0] sm:$0xff]  ;;  %v256_v45 = vld [vmem:[#allocation5 + $0x5e8] sm:$0xff] }
  0x5f   :  { %336 = vmatpush2.msra.mxu0 %v105_v49  ;;  %406 = vmatprep.subr.mxu1 %v170_v50  ;;  %v255_v46 = vld [vmem:[#allocation5 + $0x5e0] sm:$0xff]  ;;  %v254_v47 = vld [vmem:[#allocation5 + $0x5d8] sm:$0xff]  ;;  %v253_v48 = vld [vmem:[#allocation5 + $0x5d0] sm:$0xff] }
  0x60   :  { %337 = vmatprep.subr.mxu0 %v104_v51  ;;  %407 = vmatpush2.msra.mxu1 %v169_v52  ;;  %v252_v49 = vld [vmem:[#allocation5 + $0x5c8] sm:$0xff]  ;;  %v251_v50 = vld [vmem:[#allocation5 + $0x5c0] sm:$0xff]  ;;  %v250_v51 = vld [vmem:[#allocation5 + $0x5b8] sm:$0xff] }
  0x61   :  { %338 = vmatpush2.msra.mxu0 %v103_v53  ;;  %408 = vmatprep.subr.mxu1 %v168_v54  ;;  %v249_v52 = vld [vmem:[#allocation5 + $0x5b0] sm:$0xff]  ;;  %v248_v53 = vld [vmem:[#allocation5 + $0x5a8] sm:$0xff]  ;;  %v247_v54 = vld [vmem:[#allocation5 + $0x5a0] sm:$0xff] }
  0x62   :  { %339 = vmatprep.subr.mxu0 %v102_v55  ;;  %409 = vmatpush2.msra.mxu1 %v167_v56  ;;  %v246_v55 = vld [vmem:[#allocation5 + $0x598] sm:$0xff]  ;;  %v245_v56 = vld [vmem:[#allocation5 + $0x590] sm:$0xff] }
  0x63   :  { %340 = vmatpush2.msra.mxu0 %v101_v57  ;;  %410 = vmatprep.subr.mxu1 %v166_v58  ;;  %v244_v57 = vld [vmem:[#allocation5 + $0x588] sm:$0xff]  ;;  %v243_v58 = vld [vmem:[#allocation5 + $0x580] sm:$0xff] }
  0x64   :  { %341 = vmatprep.subr.mxu0 %v100_v59  ;;  %343 = vmatprep.mubr.f32.mxu0 %v61_v60  ;;  %v242_v59 = vld [vmem:[#allocation5 + $0x578] sm:$0xff]  ;;  %v241_v60 = vld [vmem:[#allocation5 + $0x570] sm:$0xff] }
  0x65   :  { %342 = vmatpush2.msra.mxu0 %v99_v61  ;;  %411 = vmatpush2.msra.mxu1 %v165_v62  ;;  %v240_v61 = vld [vmem:[#allocation5 + $0x568] sm:$0xff]  ;;  %v239_v62 = vld [vmem:[#allocation5 + $0x560] sm:$0xff] }
  0x66   :  { %344 = vmatmul.mubr.f32.vlgmr.msra.gmra.mxu0 %v60_v63  ;;  %412 = vmatprep.subr.mxu1 %v164_v0  ;;  %v238_v63 = vld [vmem:[#allocation5 + $0x558] sm:$0xff]  ;;  %v237_v0 = vld [vmem:[#allocation5 + $0x550] sm:$0xff] }
  0x67   :  { %421 = vmatprep.subr.mxu0 %v226_v1  ;;  %413 = vmatpush2.msra.mxu1 %v163_v2  ;;  %v236_v1 = vld [vmem:[#allocation5 + $0x548] sm:$0xff]  ;;  %v235_v2 = vld [vmem:[#allocation5 + $0x540] sm:$0xff] }
  0x68   :  { %414 = vmatprep.mubr.f32.mxu1 %v63_v3  ;;  %422 = vmatpush1.msra.mxu0 %v225_v4  ;;  %v234_v3 = vld [vmem:[#allocation5 + $0x538] sm:$0xff]  ;;  %v233_v4 = vld [vmem:[#allocation5 + $0x530] sm:$0xff] }
  0x69   :  { %415 = vmatmul.mubr.f32.vlgmr.msra.gmra.mxu1 %v62_v5  ;;  %423 = vmatprep.subr.mxu0 %v224_v6  ;;  %v232_v5 = vld [vmem:[#allocation5 + $0x528] sm:$0xff]  ;;  %v231_v6 = vld [vmem:[#allocation5 + $0x520] sm:$0xff] }
  0x6a   :  { %424 = vmatpush1.msra.mxu0 %v223_v7  ;;  %520 = vmatprep.subr.mxu1 %v262_v8  ;;  %v230_v7 = vld [vmem:[#allocation5 + $0x518] sm:$0xff]  ;;  %v229_v8 = vld [vmem:[#allocation5 + $0x510] sm:$0xff] }
  0x6b   :  { %425 = vmatprep.subr.mxu0 %v222_v9  ;;  %521 = vmatpush1.msra.mxu1 %v261_v10  ;;  %v228_v9 = vld [vmem:[#allocation5 + $0x508] sm:$0xff]  ;;  %v227_v10 = vld [vmem:[#allocation5 + $0x500] sm:$0xff] }
  0x6c   :  { %426 = vmatpush1.msra.mxu0 %v221_v11  ;;  %522 = vmatprep.subr.mxu1 %v260_v12  ;;  %v64_v11 = vld [vmem:[#allocation2 + $0x20] sm:$0xff]  ;;  %v596_v12 = vld [vmem:[#allocation7 + $0xf8] sm:$0xff] }
  0x6d   :  { %427 = vmatprep.subr.mxu0 %v220_v13  ;;  %485 = vmatprep.mubr.f32.mxu0 %v65_v14  ;;  %v595_v13 = vld [vmem:[#allocation7 + $0xf0] sm:$0xff]  ;;  %v594_v14 = vld [vmem:[#allocation7 + $0xe8] sm:$0xff] }
  0x6e   :  { %428 = vmatpush1.msra.mxu0 %v219_v15  ;;  %523 = vmatpush1.msra.mxu1 %v259_v16  ;;  %v593_v15 = vld [vmem:[#allocation7 + $0xe0] sm:$0xff]  ;;  %v592_v16 = vld [vmem:[#allocation7 + $0xd8] sm:$0xff] }
  0x6f   :  { %429 = vmatprep.subr.mxu0 %v218_v17  ;;  %556 = vmatprep.mubr.f32.mxu1 %v831_v22  ;;  %v591_v17 = vld [vmem:[#allocation7 + $0xd0] sm:$0xff]  ;;  %v586_v22 = vld [vmem:[#allocation7 + $0xa8] sm:$0xff] }
  0x70   :  { %430 = vmatpush1.msra.mxu0 %v217_v18  ;;  %732 = vmatmul.mubr.msk.f32.vlgmr.msra.gmra.mxu1 %vm275_vm0, %v66_v19  ;;  %v590_v18 = vld [vmem:[#allocation7 + $0xc8] sm:$0xff]  ;;  %v589_v19 = vld [vmem:[#allocation7 + $0xc0] sm:$0xff] }
  0x71   :  { %431 = vmatprep.subr.mxu0 %v216_v20  ;;  %641 = vmatprep.subr.mxu1 %v596_v12  ;;  %v588_v20 = vld [vmem:[#allocation7 + $0xb8] sm:$0xff]  ;;  %v265_v12 = vlaneseq }
  0x72   :  { %432 = vmatpush1.msra.mxu0 %v215_v21  ;;  %642 = vmatpush1.msra.mxu1 %v595_v13  ;;  %v587_v21 = vld [vmem:[#allocation7 + $0xb0] sm:$0xff] }
  0x73   :  { %433 = vmatprep.subr.mxu0 %v214_v23  ;;  %643 = vmatprep.subr.mxu1 %v594_v14  ;;  %v585_v23 = vld [vmem:[#allocation7 + $0xa0] sm:$0xff]  ;;  %v266_v13 = vshrl.u32 %v265_v12, 7 }
  0x74   :  { %434 = vmatpush1.msra.mxu0 %v213_v24  ;;  %644 = vmatpush1.msra.mxu1 %v593_v15  ;;  %v584_v24 = vld [vmem:[#allocation7 + $0x98] sm:$0xff]  ;;  %v263_v15 = vld [vmem:[%s883_s2] sm:$0x3] }
  0x75   :  { %435 = vmatprep.subr.mxu0 %v212_v25  ;;  %645 = vmatprep.subr.mxu1 %v592_v16  ;;  %v583_v25 = vld [vmem:[#allocation7 + $0x90] sm:$0xff]  ;;  %v267_v14 = vsub.s32 0, %v266_v13  ;;  %v271_v16 = vsub.s32 1, %v266_v13 }
  0x76   :  { %436 = vmatpush1.msra.mxu0 %v211_v26  ;;  %646 = vmatpush1.msra.mxu1 %v591_v17  ;;  %v582_v26 = vld [vmem:[#allocation7 + $0x88] sm:$0xff] }
  0x77   :  { %437 = vmatprep.subr.mxu0 %v210_v27  ;;  %647 = vmatprep.subr.mxu1 %v590_v18  ;;  %v581_v27 = vld [vmem:[#allocation7 + $0x80] sm:$0xff]  ;;  %v268_v18 = vrot.slane %v263_v15, %v267_v14 }
  0x78   :  { %438 = vmatpush1.msra.mxu0 %v209_v28  ;;  %648 = vmatpush1.msra.mxu1 %v589_v19  ;;  %v580_v28 = vld [vmem:[#allocation7 + $0x78] sm:$0xff]  ;;  %v272_v19 = vrot.slane %v263_v15, %v271_v16 }
  0x79   :  { %439 = vmatprep.subr.mxu0 %v208_v29  ;;  %649 = vmatprep.subr.mxu1 %v588_v20  ;;  %v579_v29 = vld [vmem:[#allocation7 + $0x70] sm:$0xff] }
  0x7a   :  { %440 = vmatpush1.msra.mxu0 %v207_v30  ;;  %650 = vmatpush1.msra.mxu1 %v587_v21  ;;  %v578_v30 = vld [vmem:[#allocation7 + $0x68] sm:$0xff] }
  0x7b   :  { %441 = vmatprep.subr.mxu0 %v206_v31  ;;  %651 = vmatprep.subr.mxu1 %v586_v22  ;;  %v577_v31 = vld [vmem:[#allocation7 + $0x60] sm:$0xff] }
  0x7c   :  { %442 = vmatpush1.msra.mxu0 %v205_v32  ;;  %652 = vmatpush1.msra.mxu1 %v585_v23  ;;  %v576_v32 = vld [vmem:[#allocation7 + $0x58] sm:$0xff] }
  0x7d   :  { %443 = vmatprep.subr.mxu0 %v204_v33  ;;  %653 = vmatprep.subr.mxu1 %v584_v24  ;;  %v575_v33 = vld [vmem:[#allocation7 + $0x50] sm:$0xff] }
  0x7e   :  { %444 = vmatpush1.msra.mxu0 %v203_v34  ;;  %654 = vmatpush1.msra.mxu1 %v583_v25  ;;  %v574_v34 = vld [vmem:[#allocation7 + $0x48] sm:$0xff] }
  0x7f   :  { %445 = vmatprep.subr.mxu0 %v202_v35  ;;  %655 = vmatprep.subr.mxu1 %v582_v26  ;;  %v573_v35 = vld [vmem:[#allocation7 + $0x40] sm:$0xff] }
  0x80   :  { %446 = vmatpush1.msra.mxu0 %v201_v36  ;;  %656 = vmatpush1.msra.mxu1 %v581_v27  ;;  %v572_v36 = vld [vmem:[#allocation7 + $0x38] sm:$0xff] }
  0x81   :  { %447 = vmatprep.subr.mxu0 %v200_v37  ;;  %657 = vmatprep.subr.mxu1 %v580_v28  ;;  %v571_v37 = vld [vmem:[#allocation7 + $0x30] sm:$0xff] }
  0x82   :  { %448 = vmatpush1.msra.mxu0 %v199_v38  ;;  %658 = vmatpush1.msra.mxu1 %v579_v29  ;;  %v570_v38 = vld [vmem:[#allocation7 + $0x28] sm:$0xff] }
  0x83   :  { %449 = vmatprep.subr.mxu0 %v198_v39  ;;  %659 = vmatprep.subr.mxu1 %v578_v30  ;;  %v569_v39 = vld [vmem:[#allocation7 + $0x20] sm:$0xff] }
  0x84   :  { %450 = vmatpush1.msra.mxu0 %v197_v40  ;;  %660 = vmatpush1.msra.mxu1 %v577_v31  ;;  %v568_v40 = vld [vmem:[#allocation7 + $0x18] sm:$0xff] }
  0x85   :  { %451 = vmatprep.subr.mxu0 %v196_v41  ;;  %661 = vmatprep.subr.mxu1 %v576_v32  ;;  %v567_v41 = vld [vmem:[#allocation7 + $0x10] sm:$0xff] }
  0x86   :  { %452 = vmatpush1.msra.mxu0 %v195_v42  ;;  %662 = vmatpush1.msra.mxu1 %v575_v33  ;;  %v566_v42 = vld [vmem:[#allocation7 + $0x8] sm:$0xff] }
  0x87   :  { %453 = vmatprep.subr.mxu0 %v258_v43  ;;  %663 = vmatprep.subr.mxu1 %v574_v34  ;;  %v565_v43 = vld [vmem:[#allocation7] sm:$0xff] }
  0x88   :  { %454 = vmatpush2.msra.mxu0 %v257_v44  ;;  %664 = vmatpush1.msra.mxu1 %v573_v35  ;;  %v628_v44 = vld [vmem:[#allocation7 + $0x1f8] sm:$0xff] }
  0x89   :  { %455 = vmatprep.subr.mxu0 %v256_v45  ;;  %665 = vmatprep.subr.mxu1 %v572_v36  ;;  %v627_v45 = vld [vmem:[#allocation7 + $0x1f0] sm:$0xff] }
  0x8a   :  { %456 = vmatpush2.msra.mxu0 %v255_v46  ;;  %666 = vmatpush1.msra.mxu1 %v571_v37  ;;  %v626_v46 = vld [vmem:[#allocation7 + $0x1e8] sm:$0xff] }
  0x8b   :  { %457 = vmatprep.subr.mxu0 %v254_v47  ;;  %667 = vmatprep.subr.mxu1 %v570_v38  ;;  %v625_v47 = vld [vmem:[#allocation7 + $0x1e0] sm:$0xff]  ;;  %v629_v37 = vld [vmem:[%s885_s4] sm:$0x3] }
  0x8c   :  { %458 = vmatpush2.msra.mxu0 %v253_v48  ;;  %668 = vmatpush1.msra.mxu1 %v569_v39  ;;  %v624_v48 = vld [vmem:[#allocation7 + $0x1d8] sm:$0xff]  ;;  %v634_v38 = vrot.slane %v629_v37, %v267_v14  ;;  %v638_v39 = vrot.slane %v629_v37, %v271_v16 }
  0x8d   :  { %459 = vmatprep.subr.mxu0 %v252_v49  ;;  %669 = vmatprep.subr.mxu1 %v568_v40  ;;  %v623_v49 = vld [vmem:[#allocation7 + $0x1d0] sm:$0xff] }
  0x8e   :  { %460 = vmatpush2.msra.mxu0 %v251_v50  ;;  %670 = vmatpush1.msra.mxu1 %v567_v41  ;;  %v622_v50 = vld [vmem:[#allocation7 + $0x1c8] sm:$0xff] }
  0x8f   :  { %461 = vmatprep.subr.mxu0 %v250_v51  ;;  %671 = vmatprep.subr.mxu1 %v566_v42  ;;  %v621_v51 = vld [vmem:[#allocation7 + $0x1c0] sm:$0xff] }
  0x90   :  { %462 = vmatpush2.msra.mxu0 %v249_v52  ;;  %672 = vmatpush1.msra.mxu1 %v565_v43  ;;  %v620_v52 = vld [vmem:[#allocation7 + $0x1b8] sm:$0xff] }
  0x91   :  { %463 = vmatprep.subr.mxu0 %v248_v53  ;;  %673 = vmatprep.subr.mxu1 %v628_v44  ;;  %v619_v53 = vld [vmem:[#allocation7 + $0x1b0] sm:$0xff] }
  0x92   :  { %464 = vmatpush2.msra.mxu0 %v247_v54  ;;  %674 = vmatpush2.msra.mxu1 %v627_v45  ;;  %v618_v54 = vld [vmem:[#allocation7 + $0x1a8] sm:$0xff] }
  0x93   :  { %465 = vmatprep.subr.mxu0 %v246_v55  ;;  %675 = vmatprep.subr.mxu1 %v626_v46  ;;  %v617_v55 = vld [vmem:[#allocation7 + $0x1a0] sm:$0xff] }
  0x94   :  { %466 = vmatpush2.msra.mxu0 %v245_v56  ;;  %676 = vmatpush2.msra.mxu1 %v625_v47  ;;  %v616_v56 = vld [vmem:[#allocation7 + $0x198] sm:$0xff] }
  0x95   :  { %467 = vmatprep.subr.mxu0 %v244_v57  ;;  %677 = vmatprep.subr.mxu1 %v624_v48  ;;  %v615_v57 = vld [vmem:[#allocation7 + $0x190] sm:$0xff] }
  0x96   :  { %468 = vmatpush2.msra.mxu0 %v243_v58  ;;  %678 = vmatpush2.msra.mxu1 %v623_v49  ;;  %v614_v58 = vld [vmem:[#allocation7 + $0x188] sm:$0xff] }
  0x97   :  { %469 = vmatprep.subr.mxu0 %v242_v59  ;;  %679 = vmatprep.subr.mxu1 %v622_v50  ;;  %v613_v59 = vld [vmem:[#allocation7 + $0x180] sm:$0xff] }
  0x98   :  { %470 = vmatpush2.msra.mxu0 %v241_v60  ;;  %680 = vmatpush2.msra.mxu1 %v621_v51  ;;  %v612_v60 = vld [vmem:[#allocation7 + $0x178] sm:$0xff] }
  0x99   :  { %471 = vmatprep.subr.mxu0 %v240_v61  ;;  %681 = vmatprep.subr.mxu1 %v620_v52  ;;  %v611_v61 = vld [vmem:[#allocation7 + $0x170] sm:$0xff] }
  0x9a   :  { %472 = vmatpush2.msra.mxu0 %v239_v62  ;;  %682 = vmatpush2.msra.mxu1 %v619_v53  ;;  %v610_v62 = vld [vmem:[#allocation7 + $0x168] sm:$0xff] }
  0x9b   :  { %473 = vmatprep.subr.mxu0 %v238_v63  ;;  %683 = vmatprep.subr.mxu1 %v618_v54  ;;  %v609_v63 = vld [vmem:[#allocation7 + $0x160] sm:$0xff] }
  0x9c   :  { %474 = vmatpush2.msra.mxu0 %v237_v0  ;;  %684 = vmatpush2.msra.mxu1 %v617_v55  ;;  %v608_v0 = vld [vmem:[#allocation7 + $0x158] sm:$0xff] }
  0x9d   :  { %475 = vmatprep.subr.mxu0 %v236_v1  ;;  %685 = vmatprep.subr.mxu1 %v616_v56  ;;  %v607_v1 = vld [vmem:[#allocation7 + $0x150] sm:$0xff] }
  0x9e   :  { %476 = vmatpush2.msra.mxu0 %v235_v2  ;;  %686 = vmatpush2.msra.mxu1 %v615_v57  ;;  %v606_v2 = vld [vmem:[#allocation7 + $0x148] sm:$0xff] }
  0x9f   :  { %477 = vmatprep.subr.mxu0 %v234_v3  ;;  %687 = vmatprep.subr.mxu1 %v614_v58  ;;  %v605_v3 = vld [vmem:[#allocation7 + $0x140] sm:$0xff] }
  0xa0   :  { %478 = vmatpush2.msra.mxu0 %v233_v4  ;;  %688 = vmatpush2.msra.mxu1 %v613_v59  ;;  %v604_v4 = vld [vmem:[#allocation7 + $0x138] sm:$0xff] }
  0xa1   :  { %479 = vmatprep.subr.mxu0 %v232_v5  ;;  %689 = vmatprep.subr.mxu1 %v612_v60  ;;  %v603_v5 = vld [vmem:[#allocation7 + $0x130] sm:$0xff] }
  0xa2   :  { %480 = vmatpush2.msra.mxu0 %v231_v6  ;;  %690 = vmatpush2.msra.mxu1 %v611_v61  ;;  %v602_v6 = vld [vmem:[#allocation7 + $0x128] sm:$0xff] }
  0xa3   :  { %481 = vmatprep.subr.mxu0 %v230_v7  ;;  %691 = vmatprep.subr.mxu1 %v610_v62  ;;  %v601_v7 = vld [vmem:[#allocation7 + $0x120] sm:$0xff] }
  0xa4   :  { %482 = vmatpush2.msra.mxu0 %v229_v8  ;;  %692 = vmatpush2.msra.mxu1 %v609_v63  ;;  %v600_v8 = vld [vmem:[#allocation7 + $0x118] sm:$0xff] }
  0xa5   :  { %483 = vmatprep.subr.mxu0 %v228_v9  ;;  %693 = vmatprep.subr.mxu1 %v608_v0  ;;  %v599_v9 = vld [vmem:[#allocation7 + $0x110] sm:$0xff] }
  0xa6   :  { %484 = vmatpush2.msra.mxu0 %v227_v10  ;;  %694 = vmatpush2.msra.mxu1 %v607_v1  ;;  %v598_v10 = vld [vmem:[#allocation7 + $0x108] sm:$0xff] }
  0xa7   :  { %486 = vmatmul.mubr.f32.vlgmr.msra.gmra.mxu0 %v64_v11  ;;  %695 = vmatprep.subr.mxu1 %v606_v2  ;;  %v597_v11 = vld [vmem:[#allocation7 + $0x100] sm:$0xff] }
  0xa8   :  { %696 = vmatpush2.msra.mxu1 %v605_v3 }
  0xa9   :  { %697 = vmatprep.subr.mxu1 %v604_v4 }
  0xaa   :  { %698 = vmatpush2.msra.mxu1 %v603_v5 }
  0xab   :  { %699 = vmatprep.subr.mxu1 %v602_v6 }
  0xac   :  { %700 = vmatpush2.msra.mxu1 %v601_v7 }
  0xad   :  { %701 = vmatprep.subr.mxu1 %v600_v8 }
  0xae   :  { %702 = vmatpush2.msra.mxu1 %v599_v9 }
  0xaf   :  { %703 = vmatprep.subr.mxu1 %v598_v10 }
  0xb0   :  { %704 = vmatpush2.msra.mxu1 %v597_v11 }
 0x126   :  { %v345_v17 = vpop.f32.mrf.mxu0 }
 0x127   :  { %v346_v22 = vadd.f32 %v345_v17, %v268_v18 }
 0x128   :  { %v347_v20 = vpop.f32.mrf.mxu0 }
 0x129   :  { %v416_v21 = vpop.f32.mrf.mxu1  ;;  %v348_v23 = vadd.f32 %v347_v20, %v272_v19 }
 0x12a   :  { %v417_v25 = vadd.f32 %v416_v21, %v346_v22 }
 0x12b   :  { %v418_v24 = vpop.f32.mrf.mxu1 }
 0x12c   :  { %v419_v28 = vadd.f32 %v418_v24, %v348_v23 }
 0x130   :  { %v558_v27 = vpop.f32.mrf.mxu1 }
 0x132   :  { %v560_v33 = vpop.f32.mrf.mxu1 }
 0x167   :  { %v487_v26 = vpop.f32.mrf.mxu0 }
 0x168   :  { %v488_v29 = vadd.f32 %v487_v26, %v417_v25 }
 0x169   :  { %v489_v30 = vpop.f32.mrf.mxu0 }
 0x16a   :  { %v490_v31 = vadd.f32 %v489_v30, %v419_v28  ;;  %v559_v32 = vadd.f32 %v558_v27, %v488_v29 }
 0x16c   :  { %v561_v34 = vadd.f32 %v560_v33, %v490_v31  ;;  %v563_v36 = vmax.f32 %v559_v32, 0.0 }
 0x16e   :  { %v564_v35 = vmax.f32 %v561_v34, 0.0 }
 0x170   :  { %705 = vmatprep.mubr.f32.mxu1 %v564_v35 }
 0x171   :  { %706 = vmatmul.mubr.f32.vlgmr.msra.gmra.mxu1 %v563_v36 }
 0x231   :  { %v707_v40 = vpop.f32.mrf.mxu1 }
 0x232   :  { %v708_v41 = vadd.f32 %v707_v40, %v634_v38 }
 0x233   :  { %v709_v42 = vpop.f32.mrf.mxu1 }
 0x234   :  { %v712_v43 = vmax.f32 %v708_v41, 0.0  ;;  %v710_v44 = vadd.f32 %v709_v42, %v638_v39 }
 0x236   :  { %714 = vst [vmem:[#allocation8] sm:$0xff] %v712_v43  ;;  %v713_v45 = vmax.f32 %v710_v44, 0.0 }
 0x238   :  { %715 = vst [vmem:[#allocation8 + $0x8] sm:$0xff] %v713_v45 }
 0x239   :  { %811 = shalt.err (!%p808_p5)
}
 0x23a   :  { %725 = dma.vmem_to_hbm [thread:$0]  %s723_s11, 256, %s886_s5, [#allocation4]  }
 0x23b   :  { %824 = dma.done.wait [#allocation4], 256  }
 0x23c   :  { %825 = vsyncadd [#allocation4], 4294967040 }
 0x23d   :  { %729 = vsyncpa [#allocation3], 1 }
 0x23e   :  { %730 = vsyncpa [#allocation6], 1 }
 0x23f   :  { %731 = vsyncpa [#allocation4], 1 }

</bundles_post_ra>
